<compile_context>
chip_gen: v5e
topology: v5e:2x2
jax: 0.10.0
libtpu: 0.0.40
codegen_flags: <defaults>
</compile_context>

<pallas_src>
import jax
import jax.numpy as jnp
from jax.experimental import pallas as pl
from jax.experimental.pallas import tpu as pltpu

_MAX_COLS = 1024                 # preferred lane-dense slab width (multiple of 128)
_TILE_BYTES = 4 * 1024 * 1024    # ~4 MiB per pipeline buffer
_VMEM_LIMIT = 32 * 1024 * 1024   # covers 4 x 4 MiB double-buffered in/out everywhere
_SMALL_ELEMS = 1 << 16           # below this, a fused XLA minimum beats any launch


def _clamp_max_kernel(x_ref, o_ref):
    # clamp(x, None, 10): upper bound only.  The int 10 is promoted to the
    # input's float dtype (exactly representable in f32/bf16/f16); jnp.minimum
    # propagates NaN exactly like torch.clamp.
    o_ref[...] = jnp.minimum(x_ref[...], jnp.asarray(10, dtype=x_ref.dtype))


def _dimension_semantics():
    # v7x has 2 TensorCores per chip: CORE_PARALLEL shards the streaming grid
    # across both so each issues its own DMA stream (~2x HBM BW for this
    # purely memory-bound op).  Single-TC v5e/v6e keep plain "parallel".
    try:
        kind = jax.devices()[0].device_kind.lower()
    except Exception:  # defensive; never expected on a TPU backend
        kind = ""
    if "v7" in kind:
        return (pltpu.CORE_PARALLEL,)
    return ("parallel",)


def _clamp_pallas(x: jax.Array) -> jax.Array:
    n = x.size                      # caller guarantees n > 0 and n % 128 == 0
    itemsize = jnp.dtype(x.dtype).itemsize

    # Widest lane-dense column count (multiple of 128) that divides n exactly,
    # so reshape(rows, cols) of the row-major array is a free bitcast (no copy).
    cols = _MAX_COLS
    while n % cols != 0:
        cols //= 2                  # 1024 -> 512 -> 256 -> 128; terminates since n % 128 == 0
    rows = n // cols

    # dtype-aware sublane packing: 8 for 4-byte, 16 for 2-byte, 32 for 1-byte.
    packing = 8 * max(1, 4 // itemsize)
    max_tile_rows = max(packing, (_TILE_BYTES // (cols * itemsize)) // packing * packing)

    # Full-extent block when it fits (block == full array dim is always legal);
    # otherwise a packing-aligned cap, with Pallas masking the ragged last
    # block.  No host-side pad and no output slice.
    tile_rows = rows if rows <= max_tile_rows else max_tile_rows
    grid = (pl.cdiv(rows, tile_rows),)

    x2d = x.reshape(rows, cols)     # free bitcast (same linear element order)

    out2d = pl.pallas_call(
        _clamp_max_kernel,
        out_shape=jax.ShapeDtypeStruct((rows, cols), x.dtype),
        grid=grid,
        in_specs=[pl.BlockSpec((tile_rows, cols), lambda i: (i, 0))],
        out_specs=pl.BlockSpec((tile_rows, cols), lambda i: (i, 0)),
        compiler_params=pltpu.CompilerParams(
            dimension_semantics=_dimension_semantics(),
            vmem_limit_bytes=_VMEM_LIMIT,
        ),
    )(x2d)

    return out2d.reshape(x.shape)   # free bitcast back


def clamp_float_input_int_max(x: jax.Array, *, force_pallas: bool = False) -> jax.Array:
    """Equivalent of torch.clamp(x, min=None, max=10) for float inputs."""
    n = x.size
    # The Pallas path is only a win when the flat size is a 128-multiple (the
    # 2-D reshape is then a free bitcast).  Anything else would need a
    # host-side pad + slice -- two extra full HBM passes -- so XLA's fused
    # jnp.minimum (already at the memory roofline) is the right implementation
    # there, as it is for tiny inputs where launch overhead dominates.
    if n == 0 or n % 128 != 0 or (n < _SMALL_ELEMS and not force_pallas):
        return jnp.minimum(x, jnp.asarray(10, dtype=x.dtype))
    return _clamp_pallas(x)


if __name__ == "__main__":
    key = jax.random.PRNGKey(0)

    # 1) Literal module example: torch.randn(5, 3) * 20 -> fused-XLA fallback
    #    (15 elements, not a 128-multiple; Pallas would only add overhead).
    x_small = jax.random.normal(key, (5, 3), dtype=jnp.float32) * 20.0
    out_small = jax.block_until_ready(clamp_float_input_int_max(x_small))
    ref_small = jnp.minimum(x_small, 10.0)
    assert out_small.shape == ref_small.shape and out_small.dtype == ref_small.dtype
    assert bool(jnp.allclose(out_small, ref_small)), "small-input mismatch"

    # 2) f32 Pallas path: 196608 elems -> (192, 1024) slab, single full-extent block.
    k1 = jax.random.fold_in(key, 1)
    x_f32 = jax.random.normal(k1, (384, 512), dtype=jnp.float32) * 20.0
    out_f32 = jax.block_until_ready(clamp_float_input_int_max(x_f32))
    assert out_f32.shape == x_f32.shape and out_f32.dtype == x_f32.dtype
    assert bool(jnp.allclose(out_f32, jnp.minimum(x_f32, 10.0))), "f32 Pallas mismatch"

    # 3) bf16 Pallas path (dtype-aware sublane packing), forced past the size bypass.
    k2 = jax.random.fold_in(key, 2)
    x_bf16 = (jax.random.normal(k2, (96, 256), dtype=jnp.float32) * 20.0).astype(jnp.bfloat16)
    out_bf16 = jax.block_until_ready(clamp_float_input_int_max(x_bf16, force_pallas=True))
    assert out_bf16.shape == x_bf16.shape and out_bf16.dtype == jnp.bfloat16
    assert bool(jnp.allclose(out_bf16.astype(jnp.float32),
                             jnp.minimum(x_bf16.astype(jnp.float32), 10.0))), "bf16 Pallas mismatch"

    # 4) Ragged row grid: 1200 rows with 1024-row tiles -> 2 grid steps, the
    #    partial last block masked by Pallas (no host-side pad/slice anywhere).
    k3 = jax.random.fold_in(key, 3)
    x_big = jax.random.normal(k3, (1200, 1024), dtype=jnp.float32) * 20.0
    out_big = jax.block_until_ready(clamp_float_input_int_max(x_big))
    assert out_big.shape == x_big.shape and out_big.dtype == x_big.dtype
    assert bool(jnp.allclose(out_big, jnp.minimum(x_big, 10.0))), "ragged-grid Pallas mismatch"

    print("KERNEL_OK")
</pallas_src>

<mosaic_0001>
module attributes {stable_mosaic.version = 11 : i64} {
  func.func @_clamp_max_kernel(%arg0: i32, %arg1: memref<192x1024xf32, #tpu.memory_space<vmem>>, %arg2: memref<192x1024xf32, #tpu.memory_space<vmem>>) attributes {dimension_semantics = [#tpu.dimension_semantics<parallel>], iteration_bounds = array<i64: 1>, scalar_prefetch = 0 : i64, scratch_operands = 0 : i64, tpu.core_type = #tpu.core_type<tc>, window_params = [{transform_indices = @transform_0, window_bounds = array<i64: 192, 1024>}, {transform_indices = @transform_1, window_bounds = array<i64: 192, 1024>}]} {
    %c0 = arith.constant 0 : index
    %c0_0 = arith.constant 0 : index
    %0 = vector.load %arg1[%c0, %c0_0] : memref<192x1024xf32, #tpu.memory_space<vmem>>, vector<192x1024xf32>
    %cst = arith.constant 1.000000e+01 : f32
    %1 = vector.broadcast %cst : f32 to vector<192x1024xf32>
    %2 = arith.minimumf %0, %1 : vector<192x1024xf32>
    %c0_1 = arith.constant 0 : index
    %c0_2 = arith.constant 0 : index
    %3 = vector.load %arg2[%c0_1, %c0_2] : memref<192x1024xf32, #tpu.memory_space<vmem>>, vector<192x1024xf32>
    tpu.vector_store %arg2[%c0_1, %c0_2], %2 {strides = array<i32>} : memref<192x1024xf32, #tpu.memory_space<vmem>>, vector<192x1024xf32>,
    return
  }
  func.func @transform_0(%arg0: i32) -> (i32, i32) {
    %c0_i32 = arith.constant 0 : i32
    %c0_i32_0 = arith.constant 0 : i32
    return %arg0, %c0_i32 : i32, i32
  }
  func.func @transform_1(%arg0: i32) -> (i32, i32) {
    %c0_i32 = arith.constant 0 : i32
    %c0_i32_0 = arith.constant 0 : i32
    return %arg0, %c0_i32 : i32, i32
  }
}

</mosaic_0001>

<bundles_post_ra>
// kernel: tpu_custom_call.1
= control target key start
LH: loop header
LB: loop body
LE: loop exit
PB: predicated region body
PF: predicated region fallthrough
CT: control target
= control target key end

     0   :  { %6 = vsyncpa [#allocation3], 0  ;;  %s702_s0 = inlined_call_operand.hbm [shape: f32[192,1024], index: 0, kind: input, shape index: {}]   ;;  %s703_s1 = inlined_call_operand.hbm [shape: f32[192,1024], index: 1, kind: output, shape index: {}]  }
   0x1   :  { %7 = vsyncpa [#allocation4], 0  ;;  %s12_s8 = sshll.u32 %s702_s0, 4  ;;  %s676_s9 = smov [#allocation2]   ;;  %s13_s8 = int_to_ptr.hbm [resolvable:$true] %s12_s8 }
   0x2   :  { %s14_s10 = sshll.u32 %s676_s9, 4  ;;  %s677_s11 = smov 1024   ;;  %s15_s10 = int_to_ptr.vmem [resolvable:$true] %s14_s10 }
   0x3   :  { %s678_s12 = smov 64  }
   0x4   :  { %20 = dma.hbm_to_vmem [thread:$0]  %s13_s8, 24576, %s15_s10, [#allocation3], %s677_s11, %s677_s11, %s678_s12  }
   0x5   :  { %672 = dma.done.wait [#allocation3], 24576  }
   0x6   :  { %673 = vsyncadd [#allocation3], 4294942720  ;;  %v25_v0 = vld [vmem:[#allocation2] sm:$0xff]  ;;  %v26_v1 = vld [vmem:[#allocation2 + $0x8] sm:$0xff]  ;;  %s679_s0 = smov [#allocation5]   ;;  %s607_s16 = sshll.u32 %s703_s1, 4  ;;  %s608_s16 = int_to_ptr.hbm [resolvable:$true] %s607_s16 }
   0x7   :  { %v27_v2 = vld [vmem:[#allocation2 + $0x10] sm:$0xff]  ;;  %v217_v3 = vmin.f32 %v25_v0, 10.0  ;;  %v218_v4 = vmin.f32 %v26_v1, 10.0  ;;  %v28_v6 = vld [vmem:[#allocation2 + $0x18] sm:$0xff]  ;;  %v29_v7 = vld [vmem:[#allocation2 + $0x20] sm:$0xff]  ;;  %s605_s13 = sshll.u32 %s679_s0, 4  ;;  %s606_s13 = int_to_ptr.vmem [resolvable:$true] %s605_s13 }
   0x8   :  { %v219_v5 = vmin.f32 %v27_v2, 10.0  ;;  %v30_v8 = vld [vmem:[#allocation2 + $0x28] sm:$0xff]  ;;  %v220_v9 = vmin.f32 %v28_v6, 10.0  ;;  %v31_v10 = vld [vmem:[#allocation2 + $0x30] sm:$0xff]  ;;  %v221_v11 = vmin.f32 %v29_v7, 10.0  ;;  %v32_v12 = vld [vmem:[#allocation2 + $0x38] sm:$0xff] }
   0x9   :  { %409 = vst [vmem:[#allocation5] sm:$0xff] %v217_v3  ;;  %v222_v13 = vmin.f32 %v30_v8, 10.0  ;;  %v33_v14 = vld [vmem:[#allocation2 + $0x40] sm:$0xff]  ;;  %v223_v15 = vmin.f32 %v31_v10, 10.0  ;;  %v34_v16 = vld [vmem:[#allocation2 + $0x48] sm:$0xff]  ;;  %v224_v17 = vmin.f32 %v32_v12, 10.0 }
   0xa   :  { %410 = vst [vmem:[#allocation5 + $0x8] sm:$0xff] %v218_v4  ;;  %v35_v18 = vld [vmem:[#allocation2 + $0x50] sm:$0xff]  ;;  %v225_v19 = vmin.f32 %v33_v14, 10.0  ;;  %v36_v20 = vld [vmem:[#allocation2 + $0x58] sm:$0xff]  ;;  %v226_v21 = vmin.f32 %v34_v16, 10.0  ;;  %v37_v22 = vld [vmem:[#allocation2 + $0x60] sm:$0xff] }
   0xb   :  { %411 = vst [vmem:[#allocation5 + $0x10] sm:$0xff] %v219_v5  ;;  %v227_v23 = vmin.f32 %v35_v18, 10.0  ;;  %v38_v24 = vld [vmem:[#allocation2 + $0x68] sm:$0xff]  ;;  %v228_v25 = vmin.f32 %v36_v20, 10.0  ;;  %v39_v26 = vld [vmem:[#allocation2 + $0x70] sm:$0xff]  ;;  %v229_v27 = vmin.f32 %v37_v22, 10.0 }
   0xc   :  { %412 = vst [vmem:[#allocation5 + $0x18] sm:$0xff] %v220_v9  ;;  %v40_v28 = vld [vmem:[#allocation2 + $0x78] sm:$0xff]  ;;  %v230_v29 = vmin.f32 %v38_v24, 10.0  ;;  %v41_v30 = vld [vmem:[#allocation2 + $0x80] sm:$0xff]  ;;  %v231_v31 = vmin.f32 %v39_v26, 10.0  ;;  %v42_v32 = vld [vmem:[#allocation2 + $0x88] sm:$0xff] }
   0xd   :  { %413 = vst [vmem:[#allocation5 + $0x20] sm:$0xff] %v221_v11  ;;  %v232_v33 = vmin.f32 %v40_v28, 10.0  ;;  %v43_v34 = vld [vmem:[#allocation2 + $0x90] sm:$0xff]  ;;  %v233_v35 = vmin.f32 %v41_v30, 10.0  ;;  %v44_v36 = vld [vmem:[#allocation2 + $0x98] sm:$0xff]  ;;  %v234_v37 = vmin.f32 %v42_v32, 10.0 }
   0xe   :  { %414 = vst [vmem:[#allocation5 + $0x28] sm:$0xff] %v222_v13  ;;  %v45_v38 = vld [vmem:[#allocation2 + $0xa0] sm:$0xff]  ;;  %v235_v39 = vmin.f32 %v43_v34, 10.0  ;;  %v46_v40 = vld [vmem:[#allocation2 + $0xa8] sm:$0xff]  ;;  %v236_v41 = vmin.f32 %v44_v36, 10.0  ;;  %v47_v42 = vld [vmem:[#allocation2 + $0xb0] sm:$0xff] }
   0xf   :  { %415 = vst [vmem:[#allocation5 + $0x30] sm:$0xff] %v223_v15  ;;  %v237_v43 = vmin.f32 %v45_v38, 10.0  ;;  %v48_v44 = vld [vmem:[#allocation2 + $0xb8] sm:$0xff]  ;;  %v238_v45 = vmin.f32 %v46_v40, 10.0  ;;  %v49_v46 = vld [vmem:[#allocation2 + $0xc0] sm:$0xff]  ;;  %v239_v47 = vmin.f32 %v47_v42, 10.0 }
  0x10   :  { %416 = vst [vmem:[#allocation5 + $0x38] sm:$0xff] %v224_v17  ;;  %v50_v48 = vld [vmem:[#allocation2 + $0xc8] sm:$0xff]  ;;  %v240_v49 = vmin.f32 %v48_v44, 10.0  ;;  %v51_v50 = vld [vmem:[#allocation2 + $0xd0] sm:$0xff]  ;;  %v241_v51 = vmin.f32 %v49_v46, 10.0  ;;  %v52_v52 = vld [vmem:[#allocation2 + $0xd8] sm:$0xff] }
  0x11   :  { %417 = vst [vmem:[#allocation5 + $0x40] sm:$0xff] %v225_v19  ;;  %v242_v53 = vmin.f32 %v50_v48, 10.0  ;;  %v53_v54 = vld [vmem:[#allocation2 + $0xe0] sm:$0xff]  ;;  %v243_v55 = vmin.f32 %v51_v50, 10.0  ;;  %v54_v56 = vld [vmem:[#allocation2 + $0xe8] sm:$0xff]  ;;  %v244_v57 = vmin.f32 %v52_v52, 10.0 }
  0x12   :  { %418 = vst [vmem:[#allocation5 + $0x48] sm:$0xff] %v226_v21  ;;  %v55_v58 = vld [vmem:[#allocation2 + $0xf0] sm:$0xff]  ;;  %v245_v59 = vmin.f32 %v53_v54, 10.0  ;;  %v56_v60 = vld [vmem:[#allocation2 + $0xf8] sm:$0xff]  ;;  %v246_v61 = vmin.f32 %v54_v56, 10.0  ;;  %v57_v62 = vld [vmem:[#allocation2 + $0x100] sm:$0xff] }
  0x13   :  { %419 = vst [vmem:[#allocation5 + $0x50] sm:$0xff] %v227_v23  ;;  %v247_v63 = vmin.f32 %v55_v58, 10.0  ;;  %v58_v0 = vld [vmem:[#allocation2 + $0x108] sm:$0xff]  ;;  %v248_v1 = vmin.f32 %v56_v60, 10.0  ;;  %v59_v2 = vld [vmem:[#allocation2 + $0x110] sm:$0xff]  ;;  %v249_v3 = vmin.f32 %v57_v62, 10.0 }
  0x14   :  { %420 = vst [vmem:[#allocation5 + $0x58] sm:$0xff] %v228_v25  ;;  %v60_v4 = vld [vmem:[#allocation2 + $0x118] sm:$0xff]  ;;  %v250_v5 = vmin.f32 %v58_v0, 10.0  ;;  %v61_v6 = vld [vmem:[#allocation2 + $0x120] sm:$0xff]  ;;  %v251_v7 = vmin.f32 %v59_v2, 10.0  ;;  %v62_v8 = vld [vmem:[#allocation2 + $0x128] sm:$0xff] }
  0x15   :  { %421 = vst [vmem:[#allocation5 + $0x60] sm:$0xff] %v229_v27  ;;  %v252_v9 = vmin.f32 %v60_v4, 10.0  ;;  %v63_v10 = vld [vmem:[#allocation2 + $0x130] sm:$0xff]  ;;  %v253_v11 = vmin.f32 %v61_v6, 10.0  ;;  %v64_v12 = vld [vmem:[#allocation2 + $0x138] sm:$0xff]  ;;  %v254_v13 = vmin.f32 %v62_v8, 10.0 }
  0x16   :  { %422 = vst [vmem:[#allocation5 + $0x68] sm:$0xff] %v230_v29  ;;  %v65_v14 = vld [vmem:[#allocation2 + $0x140] sm:$0xff]  ;;  %v255_v15 = vmin.f32 %v63_v10, 10.0  ;;  %v66_v16 = vld [vmem:[#allocation2 + $0x148] sm:$0xff]  ;;  %v256_v17 = vmin.f32 %v64_v12, 10.0  ;;  %v67_v18 = vld [vmem:[#allocation2 + $0x150] sm:$0xff] }
  0x17   :  { %423 = vst [vmem:[#allocation5 + $0x70] sm:$0xff] %v231_v31  ;;  %v257_v19 = vmin.f32 %v65_v14, 10.0  ;;  %v68_v20 = vld [vmem:[#allocation2 + $0x158] sm:$0xff]  ;;  %v258_v21 = vmin.f32 %v66_v16, 10.0  ;;  %v69_v22 = vld [vmem:[#allocation2 + $0x160] sm:$0xff]  ;;  %v259_v23 = vmin.f32 %v67_v18, 10.0 }
  0x18   :  { %424 = vst [vmem:[#allocation5 + $0x78] sm:$0xff] %v232_v33  ;;  %v70_v24 = vld [vmem:[#allocation2 + $0x168] sm:$0xff]  ;;  %v260_v25 = vmin.f32 %v68_v20, 10.0  ;;  %v71_v26 = vld [vmem:[#allocation2 + $0x170] sm:$0xff]  ;;  %v261_v27 = vmin.f32 %v69_v22, 10.0  ;;  %v72_v28 = vld [vmem:[#allocation2 + $0x178] sm:$0xff] }
  0x19   :  { %425 = vst [vmem:[#allocation5 + $0x80] sm:$0xff] %v233_v35  ;;  %v262_v29 = vmin.f32 %v70_v24, 10.0  ;;  %v73_v30 = vld [vmem:[#allocation2 + $0x180] sm:$0xff]  ;;  %v263_v31 = vmin.f32 %v71_v26, 10.0  ;;  %v74_v32 = vld [vmem:[#allocation2 + $0x188] sm:$0xff]  ;;  %v264_v33 = vmin.f32 %v72_v28, 10.0 }
  0x1a   :  { %426 = vst [vmem:[#allocation5 + $0x88] sm:$0xff] %v234_v37  ;;  %v75_v34 = vld [vmem:[#allocation2 + $0x190] sm:$0xff]  ;;  %v265_v35 = vmin.f32 %v73_v30, 10.0  ;;  %v76_v36 = vld [vmem:[#allocation2 + $0x198] sm:$0xff]  ;;  %v266_v37 = vmin.f32 %v74_v32, 10.0  ;;  %v77_v38 = vld [vmem:[#allocation2 + $0x1a0] sm:$0xff] }
  0x1b   :  { %427 = vst [vmem:[#allocation5 + $0x90] sm:$0xff] %v235_v39  ;;  %v267_v39 = vmin.f32 %v75_v34, 10.0  ;;  %v78_v40 = vld [vmem:[#allocation2 + $0x1a8] sm:$0xff]  ;;  %v79_v42 = vld [vmem:[#allocation2 + $0x1b0] sm:$0xff]  ;;  %v80_v44 = vld [vmem:[#allocation2 + $0x1b8] sm:$0xff] }
  0x1c   :  { %428 = vst [vmem:[#allocation5 + $0x98] sm:$0xff] %v236_v41  ;;  %v268_v41 = vmin.f32 %v76_v36, 10.0  ;;  %v81_v46 = vld [vmem:[#allocation2 + $0x1c0] sm:$0xff]  ;;  %v82_v48 = vld [vmem:[#allocation2 + $0x1c8] sm:$0xff]  ;;  %v83_v50 = vld [vmem:[#allocation2 + $0x1d0] sm:$0xff] }
  0x1d   :  { %429 = vst [vmem:[#allocation5 + $0xa0] sm:$0xff] %v237_v43  ;;  %v269_v43 = vmin.f32 %v77_v38, 10.0  ;;  %v84_v52 = vld [vmem:[#allocation2 + $0x1d8] sm:$0xff]  ;;  %v85_v54 = vld [vmem:[#allocation2 + $0x1e0] sm:$0xff]  ;;  %v86_v56 = vld [vmem:[#allocation2 + $0x1e8] sm:$0xff] }
  0x1e   :  { %430 = vst [vmem:[#allocation5 + $0xa8] sm:$0xff] %v238_v45  ;;  %v270_v45 = vmin.f32 %v78_v40, 10.0  ;;  %v87_v58 = vld [vmem:[#allocation2 + $0x1f0] sm:$0xff]  ;;  %v88_v60 = vld [vmem:[#allocation2 + $0x1f8] sm:$0xff]  ;;  %v89_v62 = vld [vmem:[#allocation2 + $0x200] sm:$0xff] }
  0x1f   :  { %431 = vst [vmem:[#allocation5 + $0xb0] sm:$0xff] %v239_v47  ;;  %v271_v47 = vmin.f32 %v79_v42, 10.0  ;;  %v90_v0 = vld [vmem:[#allocation2 + $0x208] sm:$0xff]  ;;  %v91_v2 = vld [vmem:[#allocation2 + $0x210] sm:$0xff]  ;;  %v92_v4 = vld [vmem:[#allocation2 + $0x218] sm:$0xff] }
  0x20   :  { %432 = vst [vmem:[#allocation5 + $0xb8] sm:$0xff] %v240_v49  ;;  %v272_v49 = vmin.f32 %v80_v44, 10.0  ;;  %v93_v6 = vld [vmem:[#allocation2 + $0x220] sm:$0xff]  ;;  %v94_v8 = vld [vmem:[#allocation2 + $0x228] sm:$0xff]  ;;  %v95_v10 = vld [vmem:[#allocation2 + $0x230] sm:$0xff] }
  0x21   :  { %433 = vst [vmem:[#allocation5 + $0xc0] sm:$0xff] %v241_v51  ;;  %v273_v51 = vmin.f32 %v81_v46, 10.0  ;;  %v96_v12 = vld [vmem:[#allocation2 + $0x238] sm:$0xff]  ;;  %v97_v14 = vld [vmem:[#allocation2 + $0x240] sm:$0xff]  ;;  %v98_v16 = vld [vmem:[#allocation2 + $0x248] sm:$0xff] }
  0x22   :  { %434 = vst [vmem:[#allocation5 + $0xc8] sm:$0xff] %v242_v53  ;;  %v274_v53 = vmin.f32 %v82_v48, 10.0  ;;  %v99_v18 = vld [vmem:[#allocation2 + $0x250] sm:$0xff]  ;;  %v100_v20 = vld [vmem:[#allocation2 + $0x258] sm:$0xff]  ;;  %v101_v22 = vld [vmem:[#allocation2 + $0x260] sm:$0xff] }
  0x23   :  { %435 = vst [vmem:[#allocation5 + $0xd0] sm:$0xff] %v243_v55  ;;  %v275_v55 = vmin.f32 %v83_v50, 10.0  ;;  %v102_v24 = vld [vmem:[#allocation2 + $0x268] sm:$0xff]  ;;  %v103_v26 = vld [vmem:[#allocation2 + $0x270] sm:$0xff]  ;;  %v104_v28 = vld [vmem:[#allocation2 + $0x278] sm:$0xff] }
  0x24   :  { %436 = vst [vmem:[#allocation5 + $0xd8] sm:$0xff] %v244_v57  ;;  %v276_v57 = vmin.f32 %v84_v52, 10.0  ;;  %v105_v30 = vld [vmem:[#allocation2 + $0x280] sm:$0xff]  ;;  %v106_v32 = vld [vmem:[#allocation2 + $0x288] sm:$0xff]  ;;  %v107_v34 = vld [vmem:[#allocation2 + $0x290] sm:$0xff] }
  0x25   :  { %437 = vst [vmem:[#allocation5 + $0xe0] sm:$0xff] %v245_v59  ;;  %v277_v59 = vmin.f32 %v85_v54, 10.0  ;;  %v108_v36 = vld [vmem:[#allocation2 + $0x298] sm:$0xff]  ;;  %v109_v38 = vld [vmem:[#allocation2 + $0x2a0] sm:$0xff]  ;;  %v110_v40 = vld [vmem:[#allocation2 + $0x2a8] sm:$0xff] }
  0x26   :  { %438 = vst [vmem:[#allocation5 + $0xe8] sm:$0xff] %v246_v61  ;;  %v278_v61 = vmin.f32 %v86_v56, 10.0  ;;  %v111_v42 = vld [vmem:[#allocation2 + $0x2b0] sm:$0xff]  ;;  %v112_v44 = vld [vmem:[#allocation2 + $0x2b8] sm:$0xff]  ;;  %v113_v46 = vld [vmem:[#allocation2 + $0x2c0] sm:$0xff] }
  0x27   :  { %439 = vst [vmem:[#allocation5 + $0xf0] sm:$0xff] %v247_v63  ;;  %v279_v63 = vmin.f32 %v87_v58, 10.0  ;;  %v114_v48 = vld [vmem:[#allocation2 + $0x2c8] sm:$0xff]  ;;  %v115_v50 = vld [vmem:[#allocation2 + $0x2d0] sm:$0xff]  ;;  %v116_v52 = vld [vmem:[#allocation2 + $0x2d8] sm:$0xff] }
  0x28   :  { %440 = vst [vmem:[#allocation5 + $0xf8] sm:$0xff] %v248_v1  ;;  %v280_v1 = vmin.f32 %v88_v60, 10.0  ;;  %v117_v54 = vld [vmem:[#allocation2 + $0x2e0] sm:$0xff]  ;;  %v118_v56 = vld [vmem:[#allocation2 + $0x2e8] sm:$0xff]  ;;  %v119_v58 = vld [vmem:[#allocation2 + $0x2f0] sm:$0xff] }
  0x29   :  { %441 = vst [vmem:[#allocation5 + $0x100] sm:$0xff] %v249_v3  ;;  %v281_v3 = vmin.f32 %v89_v62, 10.0  ;;  %v120_v60 = vld [vmem:[#allocation2 + $0x2f8] sm:$0xff]  ;;  %v121_v62 = vld [vmem:[#allocation2 + $0x300] sm:$0xff] }
  0x2a   :  { %442 = vst [vmem:[#allocation5 + $0x108] sm:$0xff] %v250_v5  ;;  %v282_v5 = vmin.f32 %v90_v0, 10.0  ;;  %v122_v0 = vld [vmem:[#allocation2 + $0x308] sm:$0xff] }
  0x2b   :  { %443 = vst [vmem:[#allocation5 + $0x110] sm:$0xff] %v251_v7  ;;  %v283_v7 = vmin.f32 %v91_v2, 10.0  ;;  %v123_v2 = vld [vmem:[#allocation2 + $0x310] sm:$0xff] }
  0x2c   :  { %444 = vst [vmem:[#allocation5 + $0x118] sm:$0xff] %v252_v9  ;;  %v284_v9 = vmin.f32 %v92_v4, 10.0  ;;  %v124_v4 = vld [vmem:[#allocation2 + $0x318] sm:$0xff] }
  0x2d   :  { %445 = vst [vmem:[#allocation5 + $0x120] sm:$0xff] %v253_v11  ;;  %v285_v11 = vmin.f32 %v93_v6, 10.0  ;;  %v125_v6 = vld [vmem:[#allocation2 + $0x320] sm:$0xff] }
  0x2e   :  { %446 = vst [vmem:[#allocation5 + $0x128] sm:$0xff] %v254_v13  ;;  %v286_v13 = vmin.f32 %v94_v8, 10.0  ;;  %v126_v8 = vld [vmem:[#allocation2 + $0x328] sm:$0xff] }
  0x2f   :  { %447 = vst [vmem:[#allocation5 + $0x130] sm:$0xff] %v255_v15  ;;  %v287_v15 = vmin.f32 %v95_v10, 10.0  ;;  %v127_v10 = vld [vmem:[#allocation2 + $0x330] sm:$0xff] }
  0x30   :  { %448 = vst [vmem:[#allocation5 + $0x138] sm:$0xff] %v256_v17  ;;  %v288_v17 = vmin.f32 %v96_v12, 10.0  ;;  %v128_v12 = vld [vmem:[#allocation2 + $0x338] sm:$0xff] }
  0x31   :  { %449 = vst [vmem:[#allocation5 + $0x140] sm:$0xff] %v257_v19  ;;  %v289_v19 = vmin.f32 %v97_v14, 10.0  ;;  %v129_v14 = vld [vmem:[#allocation2 + $0x340] sm:$0xff] }
  0x32   :  { %450 = vst [vmem:[#allocation5 + $0x148] sm:$0xff] %v258_v21  ;;  %v290_v21 = vmin.f32 %v98_v16, 10.0  ;;  %v130_v16 = vld [vmem:[#allocation2 + $0x348] sm:$0xff] }
  0x33   :  { %451 = vst [vmem:[#allocation5 + $0x150] sm:$0xff] %v259_v23  ;;  %v291_v23 = vmin.f32 %v99_v18, 10.0  ;;  %v131_v18 = vld [vmem:[#allocation2 + $0x350] sm:$0xff] }
  0x34   :  { %452 = vst [vmem:[#allocation5 + $0x158] sm:$0xff] %v260_v25  ;;  %v292_v25 = vmin.f32 %v100_v20, 10.0  ;;  %v132_v20 = vld [vmem:[#allocation2 + $0x358] sm:$0xff] }
  0x35   :  { %453 = vst [vmem:[#allocation5 + $0x160] sm:$0xff] %v261_v27  ;;  %v293_v27 = vmin.f32 %v101_v22, 10.0  ;;  %v133_v22 = vld [vmem:[#allocation2 + $0x360] sm:$0xff] }
  0x36   :  { %454 = vst [vmem:[#allocation5 + $0x168] sm:$0xff] %v262_v29  ;;  %v294_v29 = vmin.f32 %v102_v24, 10.0  ;;  %v134_v24 = vld [vmem:[#allocation2 + $0x368] sm:$0xff] }
  0x37   :  { %455 = vst [vmem:[#allocation5 + $0x170] sm:$0xff] %v263_v31  ;;  %v295_v31 = vmin.f32 %v103_v26, 10.0  ;;  %v135_v26 = vld [vmem:[#allocation2 + $0x370] sm:$0xff] }
  0x38   :  { %456 = vst [vmem:[#allocation5 + $0x178] sm:$0xff] %v264_v33  ;;  %v296_v33 = vmin.f32 %v104_v28, 10.0  ;;  %v136_v28 = vld [vmem:[#allocation2 + $0x378] sm:$0xff] }
  0x39   :  { %457 = vst [vmem:[#allocation5 + $0x180] sm:$0xff] %v265_v35  ;;  %v297_v35 = vmin.f32 %v105_v30, 10.0  ;;  %v137_v30 = vld [vmem:[#allocation2 + $0x380] sm:$0xff] }
  0x3a   :  { %458 = vst [vmem:[#allocation5 + $0x188] sm:$0xff] %v266_v37  ;;  %v298_v37 = vmin.f32 %v106_v32, 10.0  ;;  %v138_v32 = vld [vmem:[#allocation2 + $0x388] sm:$0xff] }
  0x3b   :  { %459 = vst [vmem:[#allocation5 + $0x190] sm:$0xff] %v267_v39  ;;  %v299_v39 = vmin.f32 %v107_v34, 10.0  ;;  %v139_v34 = vld [vmem:[#allocation2 + $0x390] sm:$0xff] }
  0x3c   :  { %460 = vst [vmem:[#allocation5 + $0x198] sm:$0xff] %v268_v41  ;;  %v300_v41 = vmin.f32 %v108_v36, 10.0  ;;  %v140_v36 = vld [vmem:[#allocation2 + $0x398] sm:$0xff] }
  0x3d   :  { %461 = vst [vmem:[#allocation5 + $0x1a0] sm:$0xff] %v269_v43  ;;  %v301_v43 = vmin.f32 %v109_v38, 10.0  ;;  %v141_v38 = vld [vmem:[#allocation2 + $0x3a0] sm:$0xff] }
  0x3e   :  { %462 = vst [vmem:[#allocation5 + $0x1a8] sm:$0xff] %v270_v45  ;;  %v302_v45 = vmin.f32 %v110_v40, 10.0  ;;  %v142_v40 = vld [vmem:[#allocation2 + $0x3a8] sm:$0xff] }
  0x3f   :  { %463 = vst [vmem:[#allocation5 + $0x1b0] sm:$0xff] %v271_v47  ;;  %v303_v47 = vmin.f32 %v111_v42, 10.0  ;;  %v143_v42 = vld [vmem:[#allocation2 + $0x3b0] sm:$0xff] }
  0x40   :  { %464 = vst [vmem:[#allocation5 + $0x1b8] sm:$0xff] %v272_v49  ;;  %v304_v49 = vmin.f32 %v112_v44, 10.0  ;;  %v144_v44 = vld [vmem:[#allocation2 + $0x3b8] sm:$0xff] }
  0x41   :  { %465 = vst [vmem:[#allocation5 + $0x1c0] sm:$0xff] %v273_v51  ;;  %v305_v51 = vmin.f32 %v113_v46, 10.0  ;;  %v145_v46 = vld [vmem:[#allocation2 + $0x3c0] sm:$0xff] }
  0x42   :  { %466 = vst [vmem:[#allocation5 + $0x1c8] sm:$0xff] %v274_v53  ;;  %v306_v53 = vmin.f32 %v114_v48, 10.0  ;;  %v146_v48 = vld [vmem:[#allocation2 + $0x3c8] sm:$0xff] }
  0x43   :  { %467 = vst [vmem:[#allocation5 + $0x1d0] sm:$0xff] %v275_v55  ;;  %v307_v55 = vmin.f32 %v115_v50, 10.0  ;;  %v147_v50 = vld [vmem:[#allocation2 + $0x3d0] sm:$0xff] }
  0x44   :  { %468 = vst [vmem:[#allocation5 + $0x1d8] sm:$0xff] %v276_v57  ;;  %v308_v57 = vmin.f32 %v116_v52, 10.0  ;;  %v148_v52 = vld [vmem:[#allocation2 + $0x3d8] sm:$0xff] }
  0x45   :  { %469 = vst [vmem:[#allocation5 + $0x1e0] sm:$0xff] %v277_v59  ;;  %v309_v59 = vmin.f32 %v117_v54, 10.0  ;;  %v149_v54 = vld [vmem:[#allocation2 + $0x3e0] sm:$0xff] }
  0x46   :  { %470 = vst [vmem:[#allocation5 + $0x1e8] sm:$0xff] %v278_v61  ;;  %v310_v61 = vmin.f32 %v118_v56, 10.0  ;;  %v150_v56 = vld [vmem:[#allocation2 + $0x3e8] sm:$0xff] }
  0x47   :  { %471 = vst [vmem:[#allocation5 + $0x1f0] sm:$0xff] %v279_v63  ;;  %v311_v63 = vmin.f32 %v119_v58, 10.0  ;;  %v151_v58 = vld [vmem:[#allocation2 + $0x3f0] sm:$0xff] }
  0x48   :  { %472 = vst [vmem:[#allocation5 + $0x1f8] sm:$0xff] %v280_v1  ;;  %v312_v1 = vmin.f32 %v120_v60, 10.0  ;;  %v152_v60 = vld [vmem:[#allocation2 + $0x3f8] sm:$0xff] }
  0x49   :  { %473 = vst [vmem:[#allocation5 + $0x200] sm:$0xff] %v281_v3  ;;  %v313_v3 = vmin.f32 %v121_v62, 10.0  ;;  %v153_v62 = vld [vmem:[#allocation2 + $0x400] sm:$0xff] }
  0x4a   :  { %474 = vst [vmem:[#allocation5 + $0x208] sm:$0xff] %v282_v5  ;;  %v314_v5 = vmin.f32 %v122_v0, 10.0  ;;  %v154_v0 = vld [vmem:[#allocation2 + $0x408] sm:$0xff] }
  0x4b   :  { %475 = vst [vmem:[#allocation5 + $0x210] sm:$0xff] %v283_v7  ;;  %v315_v7 = vmin.f32 %v123_v2, 10.0  ;;  %v155_v2 = vld [vmem:[#allocation2 + $0x410] sm:$0xff] }
  0x4c   :  { %476 = vst [vmem:[#allocation5 + $0x218] sm:$0xff] %v284_v9  ;;  %v316_v9 = vmin.f32 %v124_v4, 10.0  ;;  %v156_v4 = vld [vmem:[#allocation2 + $0x418] sm:$0xff] }
  0x4d   :  { %477 = vst [vmem:[#allocation5 + $0x220] sm:$0xff] %v285_v11  ;;  %v317_v11 = vmin.f32 %v125_v6, 10.0  ;;  %v157_v6 = vld [vmem:[#allocation2 + $0x420] sm:$0xff] }
  0x4e   :  { %478 = vst [vmem:[#allocation5 + $0x228] sm:$0xff] %v286_v13  ;;  %v318_v13 = vmin.f32 %v126_v8, 10.0  ;;  %v158_v8 = vld [vmem:[#allocation2 + $0x428] sm:$0xff] }
  0x4f   :  { %479 = vst [vmem:[#allocation5 + $0x230] sm:$0xff] %v287_v15  ;;  %v319_v15 = vmin.f32 %v127_v10, 10.0  ;;  %v159_v10 = vld [vmem:[#allocation2 + $0x430] sm:$0xff] }
  0x50   :  { %480 = vst [vmem:[#allocation5 + $0x238] sm:$0xff] %v288_v17  ;;  %v320_v17 = vmin.f32 %v128_v12, 10.0  ;;  %v160_v12 = vld [vmem:[#allocation2 + $0x438] sm:$0xff] }
  0x51   :  { %481 = vst [vmem:[#allocation5 + $0x240] sm:$0xff] %v289_v19  ;;  %v321_v19 = vmin.f32 %v129_v14, 10.0  ;;  %v161_v14 = vld [vmem:[#allocation2 + $0x440] sm:$0xff] }
  0x52   :  { %482 = vst [vmem:[#allocation5 + $0x248] sm:$0xff] %v290_v21  ;;  %v322_v21 = vmin.f32 %v130_v16, 10.0  ;;  %v162_v16 = vld [vmem:[#allocation2 + $0x448] sm:$0xff] }
  0x53   :  { %483 = vst [vmem:[#allocation5 + $0x250] sm:$0xff] %v291_v23  ;;  %v323_v23 = vmin.f32 %v131_v18, 10.0  ;;  %v163_v18 = vld [vmem:[#allocation2 + $0x450] sm:$0xff] }
  0x54   :  { %484 = vst [vmem:[#allocation5 + $0x258] sm:$0xff] %v292_v25  ;;  %v324_v25 = vmin.f32 %v132_v20, 10.0  ;;  %v164_v20 = vld [vmem:[#allocation2 + $0x458] sm:$0xff] }
  0x55   :  { %485 = vst [vmem:[#allocation5 + $0x260] sm:$0xff] %v293_v27  ;;  %v325_v27 = vmin.f32 %v133_v22, 10.0  ;;  %v165_v22 = vld [vmem:[#allocation2 + $0x460] sm:$0xff] }
  0x56   :  { %486 = vst [vmem:[#allocation5 + $0x268] sm:$0xff] %v294_v29  ;;  %v326_v29 = vmin.f32 %v134_v24, 10.0  ;;  %v166_v24 = vld [vmem:[#allocation2 + $0x468] sm:$0xff] }
  0x57   :  { %487 = vst [vmem:[#allocation5 + $0x270] sm:$0xff] %v295_v31  ;;  %v327_v31 = vmin.f32 %v135_v26, 10.0  ;;  %v167_v26 = vld [vmem:[#allocation2 + $0x470] sm:$0xff] }
  0x58   :  { %488 = vst [vmem:[#allocation5 + $0x278] sm:$0xff] %v296_v33  ;;  %v328_v33 = vmin.f32 %v136_v28, 10.0  ;;  %v168_v28 = vld [vmem:[#allocation2 + $0x478] sm:$0xff] }
  0x59   :  { %489 = vst [vmem:[#allocation5 + $0x280] sm:$0xff] %v297_v35  ;;  %v329_v35 = vmin.f32 %v137_v30, 10.0  ;;  %v169_v30 = vld [vmem:[#allocation2 + $0x480] sm:$0xff] }
  0x5a   :  { %490 = vst [vmem:[#allocation5 + $0x288] sm:$0xff] %v298_v37  ;;  %v330_v37 = vmin.f32 %v138_v32, 10.0  ;;  %v170_v32 = vld [vmem:[#allocation2 + $0x488] sm:$0xff] }
  0x5b   :  { %491 = vst [vmem:[#allocation5 + $0x290] sm:$0xff] %v299_v39  ;;  %v331_v39 = vmin.f32 %v139_v34, 10.0  ;;  %v171_v34 = vld [vmem:[#allocation2 + $0x490] sm:$0xff] }
  0x5c   :  { %492 = vst [vmem:[#allocation5 + $0x298] sm:$0xff] %v300_v41  ;;  %v332_v41 = vmin.f32 %v140_v36, 10.0  ;;  %v172_v36 = vld [vmem:[#allocation2 + $0x498] sm:$0xff] }
  0x5d   :  { %493 = vst [vmem:[#allocation5 + $0x2a0] sm:$0xff] %v301_v43  ;;  %v333_v43 = vmin.f32 %v141_v38, 10.0  ;;  %v173_v38 = vld [vmem:[#allocation2 + $0x4a0] sm:$0xff] }
  0x5e   :  { %494 = vst [vmem:[#allocation5 + $0x2a8] sm:$0xff] %v302_v45  ;;  %v334_v45 = vmin.f32 %v142_v40, 10.0  ;;  %v174_v40 = vld [vmem:[#allocation2 + $0x4a8] sm:$0xff] }
  0x5f   :  { %495 = vst [vmem:[#allocation5 + $0x2b0] sm:$0xff] %v303_v47  ;;  %v335_v47 = vmin.f32 %v143_v42, 10.0  ;;  %v175_v42 = vld [vmem:[#allocation2 + $0x4b0] sm:$0xff] }
  0x60   :  { %496 = vst [vmem:[#allocation5 + $0x2b8] sm:$0xff] %v304_v49  ;;  %v336_v49 = vmin.f32 %v144_v44, 10.0  ;;  %v176_v44 = vld [vmem:[#allocation2 + $0x4b8] sm:$0xff] }
  0x61   :  { %497 = vst [vmem:[#allocation5 + $0x2c0] sm:$0xff] %v305_v51  ;;  %v337_v51 = vmin.f32 %v145_v46, 10.0  ;;  %v177_v46 = vld [vmem:[#allocation2 + $0x4c0] sm:$0xff] }
  0x62   :  { %498 = vst [vmem:[#allocation5 + $0x2c8] sm:$0xff] %v306_v53  ;;  %v338_v53 = vmin.f32 %v146_v48, 10.0  ;;  %v178_v48 = vld [vmem:[#allocation2 + $0x4c8] sm:$0xff] }
  0x63   :  { %499 = vst [vmem:[#allocation5 + $0x2d0] sm:$0xff] %v307_v55  ;;  %v339_v55 = vmin.f32 %v147_v50, 10.0  ;;  %v179_v50 = vld [vmem:[#allocation2 + $0x4d0] sm:$0xff] }
  0x64   :  { %500 = vst [vmem:[#allocation5 + $0x2d8] sm:$0xff] %v308_v57  ;;  %v340_v57 = vmin.f32 %v148_v52, 10.0  ;;  %v180_v52 = vld [vmem:[#allocation2 + $0x4d8] sm:$0xff] }
  0x65   :  { %501 = vst [vmem:[#allocation5 + $0x2e0] sm:$0xff] %v309_v59  ;;  %v341_v59 = vmin.f32 %v149_v54, 10.0  ;;  %v181_v54 = vld [vmem:[#allocation2 + $0x4e0] sm:$0xff] }
  0x66   :  { %502 = vst [vmem:[#allocation5 + $0x2e8] sm:$0xff] %v310_v61  ;;  %v342_v61 = vmin.f32 %v150_v56, 10.0  ;;  %v182_v56 = vld [vmem:[#allocation2 + $0x4e8] sm:$0xff] }
  0x67   :  { %503 = vst [vmem:[#allocation5 + $0x2f0] sm:$0xff] %v311_v63  ;;  %v343_v63 = vmin.f32 %v151_v58, 10.0  ;;  %v183_v58 = vld [vmem:[#allocation2 + $0x4f0] sm:$0xff] }
  0x68   :  { %504 = vst [vmem:[#allocation5 + $0x2f8] sm:$0xff] %v312_v1  ;;  %v344_v1 = vmin.f32 %v152_v60, 10.0  ;;  %v184_v60 = vld [vmem:[#allocation2 + $0x4f8] sm:$0xff] }
  0x69   :  { %505 = vst [vmem:[#allocation5 + $0x300] sm:$0xff] %v313_v3  ;;  %v345_v3 = vmin.f32 %v153_v62, 10.0  ;;  %v185_v62 = vld [vmem:[#allocation2 + $0x500] sm:$0xff] }
  0x6a   :  { %506 = vst [vmem:[#allocation5 + $0x308] sm:$0xff] %v314_v5  ;;  %v346_v5 = vmin.f32 %v154_v0, 10.0  ;;  %v186_v0 = vld [vmem:[#allocation2 + $0x508] sm:$0xff] }
  0x6b   :  { %507 = vst [vmem:[#allocation5 + $0x310] sm:$0xff] %v315_v7  ;;  %v347_v7 = vmin.f32 %v155_v2, 10.0  ;;  %v187_v2 = vld [vmem:[#allocation2 + $0x510] sm:$0xff] }
  0x6c   :  { %508 = vst [vmem:[#allocation5 + $0x318] sm:$0xff] %v316_v9  ;;  %v348_v9 = vmin.f32 %v156_v4, 10.0  ;;  %v188_v4 = vld [vmem:[#allocation2 + $0x518] sm:$0xff] }
  0x6d   :  { %509 = vst [vmem:[#allocation5 + $0x320] sm:$0xff] %v317_v11  ;;  %v349_v11 = vmin.f32 %v157_v6, 10.0  ;;  %v189_v6 = vld [vmem:[#allocation2 + $0x520] sm:$0xff] }
  0x6e   :  { %510 = vst [vmem:[#allocation5 + $0x328] sm:$0xff] %v318_v13  ;;  %v350_v13 = vmin.f32 %v158_v8, 10.0  ;;  %v190_v8 = vld [vmem:[#allocation2 + $0x528] sm:$0xff] }
  0x6f   :  { %511 = vst [vmem:[#allocation5 + $0x330] sm:$0xff] %v319_v15  ;;  %v351_v15 = vmin.f32 %v159_v10, 10.0  ;;  %v191_v10 = vld [vmem:[#allocation2 + $0x530] sm:$0xff] }
  0x70   :  { %512 = vst [vmem:[#allocation5 + $0x338] sm:$0xff] %v320_v17  ;;  %v352_v17 = vmin.f32 %v160_v12, 10.0  ;;  %v192_v12 = vld [vmem:[#allocation2 + $0x538] sm:$0xff] }
  0x71   :  { %513 = vst [vmem:[#allocation5 + $0x340] sm:$0xff] %v321_v19  ;;  %v353_v19 = vmin.f32 %v161_v14, 10.0  ;;  %v193_v14 = vld [vmem:[#allocation2 + $0x540] sm:$0xff] }
  0x72   :  { %514 = vst [vmem:[#allocation5 + $0x348] sm:$0xff] %v322_v21  ;;  %v354_v21 = vmin.f32 %v162_v16, 10.0  ;;  %v194_v16 = vld [vmem:[#allocation2 + $0x548] sm:$0xff] }
  0x73   :  { %515 = vst [vmem:[#allocation5 + $0x350] sm:$0xff] %v323_v23  ;;  %v355_v23 = vmin.f32 %v163_v18, 10.0  ;;  %v195_v18 = vld [vmem:[#allocation2 + $0x550] sm:$0xff] }
  0x74   :  { %516 = vst [vmem:[#allocation5 + $0x358] sm:$0xff] %v324_v25  ;;  %v356_v25 = vmin.f32 %v164_v20, 10.0  ;;  %v196_v20 = vld [vmem:[#allocation2 + $0x558] sm:$0xff] }
  0x75   :  { %517 = vst [vmem:[#allocation5 + $0x360] sm:$0xff] %v325_v27  ;;  %v357_v27 = vmin.f32 %v165_v22, 10.0  ;;  %v197_v22 = vld [vmem:[#allocation2 + $0x560] sm:$0xff] }
  0x76   :  { %518 = vst [vmem:[#allocation5 + $0x368] sm:$0xff] %v326_v29  ;;  %v358_v29 = vmin.f32 %v166_v24, 10.0  ;;  %v198_v24 = vld [vmem:[#allocation2 + $0x568] sm:$0xff] }
  0x77   :  { %519 = vst [vmem:[#allocation5 + $0x370] sm:$0xff] %v327_v31  ;;  %v359_v31 = vmin.f32 %v167_v26, 10.0  ;;  %v199_v26 = vld [vmem:[#allocation2 + $0x570] sm:$0xff] }
  0x78   :  { %520 = vst [vmem:[#allocation5 + $0x378] sm:$0xff] %v328_v33  ;;  %v360_v33 = vmin.f32 %v168_v28, 10.0  ;;  %v200_v28 = vld [vmem:[#allocation2 + $0x578] sm:$0xff] }
  0x79   :  { %521 = vst [vmem:[#allocation5 + $0x380] sm:$0xff] %v329_v35  ;;  %v361_v35 = vmin.f32 %v169_v30, 10.0  ;;  %v201_v30 = vld [vmem:[#allocation2 + $0x580] sm:$0xff] }
  0x7a   :  { %522 = vst [vmem:[#allocation5 + $0x388] sm:$0xff] %v330_v37  ;;  %v362_v37 = vmin.f32 %v170_v32, 10.0  ;;  %v202_v32 = vld [vmem:[#allocation2 + $0x588] sm:$0xff] }
  0x7b   :  { %523 = vst [vmem:[#allocation5 + $0x390] sm:$0xff] %v331_v39  ;;  %v363_v39 = vmin.f32 %v171_v34, 10.0  ;;  %v203_v34 = vld [vmem:[#allocation2 + $0x590] sm:$0xff] }
  0x7c   :  { %524 = vst [vmem:[#allocation5 + $0x398] sm:$0xff] %v332_v41  ;;  %v364_v41 = vmin.f32 %v172_v36, 10.0  ;;  %v204_v36 = vld [vmem:[#allocation2 + $0x598] sm:$0xff] }
  0x7d   :  { %525 = vst [vmem:[#allocation5 + $0x3a0] sm:$0xff] %v333_v43  ;;  %v365_v43 = vmin.f32 %v173_v38, 10.0  ;;  %v205_v38 = vld [vmem:[#allocation2 + $0x5a0] sm:$0xff] }
  0x7e   :  { %526 = vst [vmem:[#allocation5 + $0x3a8] sm:$0xff] %v334_v45  ;;  %v366_v45 = vmin.f32 %v174_v40, 10.0  ;;  %v206_v40 = vld [vmem:[#allocation2 + $0x5a8] sm:$0xff] }
  0x7f   :  { %527 = vst [vmem:[#allocation5 + $0x3b0] sm:$0xff] %v335_v47  ;;  %v367_v47 = vmin.f32 %v175_v42, 10.0  ;;  %v207_v42 = vld [vmem:[#allocation2 + $0x5b0] sm:$0xff] }
  0x80   :  { %528 = vst [vmem:[#allocation5 + $0x3b8] sm:$0xff] %v336_v49  ;;  %v368_v49 = vmin.f32 %v176_v44, 10.0  ;;  %v208_v44 = vld [vmem:[#allocation2 + $0x5b8] sm:$0xff] }
  0x81   :  { %529 = vst [vmem:[#allocation5 + $0x3c0] sm:$0xff] %v337_v51  ;;  %v369_v51 = vmin.f32 %v177_v46, 10.0  ;;  %v209_v46 = vld [vmem:[#allocation2 + $0x5c0] sm:$0xff] }
  0x82   :  { %530 = vst [vmem:[#allocation5 + $0x3c8] sm:$0xff] %v338_v53  ;;  %v370_v53 = vmin.f32 %v178_v48, 10.0  ;;  %v210_v48 = vld [vmem:[#allocation2 + $0x5c8] sm:$0xff] }
  0x83   :  { %531 = vst [vmem:[#allocation5 + $0x3d0] sm:$0xff] %v339_v55  ;;  %v371_v55 = vmin.f32 %v179_v50, 10.0  ;;  %v211_v50 = vld [vmem:[#allocation2 + $0x5d0] sm:$0xff] }
  0x84   :  { %532 = vst [vmem:[#allocation5 + $0x3d8] sm:$0xff] %v340_v57  ;;  %v372_v57 = vmin.f32 %v180_v52, 10.0  ;;  %v212_v52 = vld [vmem:[#allocation2 + $0x5d8] sm:$0xff] }
  0x85   :  { %533 = vst [vmem:[#allocation5 + $0x3e0] sm:$0xff] %v341_v59  ;;  %v373_v59 = vmin.f32 %v181_v54, 10.0  ;;  %v213_v54 = vld [vmem:[#allocation2 + $0x5e0] sm:$0xff] }
  0x86   :  { %534 = vst [vmem:[#allocation5 + $0x3e8] sm:$0xff] %v342_v61  ;;  %v374_v61 = vmin.f32 %v182_v56, 10.0  ;;  %v214_v56 = vld [vmem:[#allocation2 + $0x5e8] sm:$0xff] }
  0x87   :  { %535 = vst [vmem:[#allocation5 + $0x3f0] sm:$0xff] %v343_v63  ;;  %v375_v63 = vmin.f32 %v183_v58, 10.0  ;;  %v215_v58 = vld [vmem:[#allocation2 + $0x5f0] sm:$0xff] }
  0x88   :  { %536 = vst [vmem:[#allocation5 + $0x3f8] sm:$0xff] %v344_v1  ;;  %v376_v1 = vmin.f32 %v184_v60, 10.0  ;;  %v216_v60 = vld [vmem:[#allocation2 + $0x5f8] sm:$0xff] }
  0x89   :  { %537 = vst [vmem:[#allocation5 + $0x400] sm:$0xff] %v345_v3  ;;  %v377_v3 = vmin.f32 %v185_v62, 10.0  ;;  %v407_v62 = vmin.f32 %v215_v58, 10.0 }
  0x8a   :  { %538 = vst [vmem:[#allocation5 + $0x408] sm:$0xff] %v346_v5  ;;  %v378_v5 = vmin.f32 %v186_v0, 10.0 }
  0x8b   :  { %539 = vst [vmem:[#allocation5 + $0x410] sm:$0xff] %v347_v7  ;;  %v379_v7 = vmin.f32 %v187_v2, 10.0 }
  0x8c   :  { %540 = vst [vmem:[#allocation5 + $0x418] sm:$0xff] %v348_v9  ;;  %v380_v9 = vmin.f32 %v188_v4, 10.0 }
  0x8d   :  { %541 = vst [vmem:[#allocation5 + $0x420] sm:$0xff] %v349_v11  ;;  %v381_v11 = vmin.f32 %v189_v6, 10.0 }
  0x8e   :  { %542 = vst [vmem:[#allocation5 + $0x428] sm:$0xff] %v350_v13  ;;  %v382_v13 = vmin.f32 %v190_v8, 10.0 }
  0x8f   :  { %543 = vst [vmem:[#allocation5 + $0x430] sm:$0xff] %v351_v15  ;;  %v383_v15 = vmin.f32 %v191_v10, 10.0 }
  0x90   :  { %544 = vst [vmem:[#allocation5 + $0x438] sm:$0xff] %v352_v17  ;;  %v384_v17 = vmin.f32 %v192_v12, 10.0 }
  0x91   :  { %545 = vst [vmem:[#allocation5 + $0x440] sm:$0xff] %v353_v19  ;;  %v385_v19 = vmin.f32 %v193_v14, 10.0 }
  0x92   :  { %546 = vst [vmem:[#allocation5 + $0x448] sm:$0xff] %v354_v21  ;;  %v386_v21 = vmin.f32 %v194_v16, 10.0 }
  0x93   :  { %547 = vst [vmem:[#allocation5 + $0x450] sm:$0xff] %v355_v23  ;;  %v387_v23 = vmin.f32 %v195_v18, 10.0 }
  0x94   :  { %548 = vst [vmem:[#allocation5 + $0x458] sm:$0xff] %v356_v25  ;;  %v388_v25 = vmin.f32 %v196_v20, 10.0 }
  0x95   :  { %549 = vst [vmem:[#allocation5 + $0x460] sm:$0xff] %v357_v27  ;;  %v389_v27 = vmin.f32 %v197_v22, 10.0 }
  0x96   :  { %550 = vst [vmem:[#allocation5 + $0x468] sm:$0xff] %v358_v29  ;;  %v390_v29 = vmin.f32 %v198_v24, 10.0 }
  0x97   :  { %551 = vst [vmem:[#allocation5 + $0x470] sm:$0xff] %v359_v31  ;;  %v391_v31 = vmin.f32 %v199_v26, 10.0 }
  0x98   :  { %552 = vst [vmem:[#allocation5 + $0x478] sm:$0xff] %v360_v33  ;;  %v392_v33 = vmin.f32 %v200_v28, 10.0 }
  0x99   :  { %553 = vst [vmem:[#allocation5 + $0x480] sm:$0xff] %v361_v35  ;;  %v393_v35 = vmin.f32 %v201_v30, 10.0 }
  0x9a   :  { %554 = vst [vmem:[#allocation5 + $0x488] sm:$0xff] %v362_v37  ;;  %v394_v37 = vmin.f32 %v202_v32, 10.0 }
  0x9b   :  { %555 = vst [vmem:[#allocation5 + $0x490] sm:$0xff] %v363_v39  ;;  %v395_v39 = vmin.f32 %v203_v34, 10.0 }
  0x9c   :  { %556 = vst [vmem:[#allocation5 + $0x498] sm:$0xff] %v364_v41  ;;  %v396_v41 = vmin.f32 %v204_v36, 10.0 }
  0x9d   :  { %557 = vst [vmem:[#allocation5 + $0x4a0] sm:$0xff] %v365_v43  ;;  %v397_v43 = vmin.f32 %v205_v38, 10.0 }
  0x9e   :  { %558 = vst [vmem:[#allocation5 + $0x4a8] sm:$0xff] %v366_v45  ;;  %v398_v45 = vmin.f32 %v206_v40, 10.0 }
  0x9f   :  { %559 = vst [vmem:[#allocation5 + $0x4b0] sm:$0xff] %v367_v47  ;;  %v399_v47 = vmin.f32 %v207_v42, 10.0 }
  0xa0   :  { %560 = vst [vmem:[#allocation5 + $0x4b8] sm:$0xff] %v368_v49  ;;  %v400_v49 = vmin.f32 %v208_v44, 10.0 }
  0xa1   :  { %561 = vst [vmem:[#allocation5 + $0x4c0] sm:$0xff] %v369_v51  ;;  %v401_v51 = vmin.f32 %v209_v46, 10.0 }
  0xa2   :  { %562 = vst [vmem:[#allocation5 + $0x4c8] sm:$0xff] %v370_v53  ;;  %v402_v53 = vmin.f32 %v210_v48, 10.0 }
  0xa3   :  { %563 = vst [vmem:[#allocation5 + $0x4d0] sm:$0xff] %v371_v55  ;;  %v403_v55 = vmin.f32 %v211_v50, 10.0 }
  0xa4   :  { %564 = vst [vmem:[#allocation5 + $0x4d8] sm:$0xff] %v372_v57  ;;  %v404_v57 = vmin.f32 %v212_v52, 10.0 }
  0xa5   :  { %565 = vst [vmem:[#allocation5 + $0x4e0] sm:$0xff] %v373_v59  ;;  %v405_v59 = vmin.f32 %v213_v54, 10.0 }
  0xa6   :  { %566 = vst [vmem:[#allocation5 + $0x4e8] sm:$0xff] %v374_v61  ;;  %v406_v61 = vmin.f32 %v214_v56, 10.0 }
  0xa7   :  { %567 = vst [vmem:[#allocation5 + $0x4f0] sm:$0xff] %v375_v63  ;;  %v408_v63 = vmin.f32 %v216_v60, 10.0 }
  0xa8   :  { %568 = vst [vmem:[#allocation5 + $0x4f8] sm:$0xff] %v376_v1 }
  0xa9   :  { %569 = vst [vmem:[#allocation5 + $0x500] sm:$0xff] %v377_v3 }
  0xaa   :  { %570 = vst [vmem:[#allocation5 + $0x508] sm:$0xff] %v378_v5 }
  0xab   :  { %571 = vst [vmem:[#allocation5 + $0x510] sm:$0xff] %v379_v7 }
  0xac   :  { %572 = vst [vmem:[#allocation5 + $0x518] sm:$0xff] %v380_v9 }
  0xad   :  { %573 = vst [vmem:[#allocation5 + $0x520] sm:$0xff] %v381_v11 }
  0xae   :  { %574 = vst [vmem:[#allocation5 + $0x528] sm:$0xff] %v382_v13 }
  0xaf   :  { %575 = vst [vmem:[#allocation5 + $0x530] sm:$0xff] %v383_v15 }
  0xb0   :  { %576 = vst [vmem:[#allocation5 + $0x538] sm:$0xff] %v384_v17 }
  0xb1   :  { %577 = vst [vmem:[#allocation5 + $0x540] sm:$0xff] %v385_v19 }
  0xb2   :  { %578 = vst [vmem:[#allocation5 + $0x548] sm:$0xff] %v386_v21 }
  0xb3   :  { %579 = vst [vmem:[#allocation5 + $0x550] sm:$0xff] %v387_v23 }
  0xb4   :  { %580 = vst [vmem:[#allocation5 + $0x558] sm:$0xff] %v388_v25 }
  0xb5   :  { %581 = vst [vmem:[#allocation5 + $0x560] sm:$0xff] %v389_v27 }
  0xb6   :  { %582 = vst [vmem:[#allocation5 + $0x568] sm:$0xff] %v390_v29 }
  0xb7   :  { %583 = vst [vmem:[#allocation5 + $0x570] sm:$0xff] %v391_v31 }
  0xb8   :  { %584 = vst [vmem:[#allocation5 + $0x578] sm:$0xff] %v392_v33 }
  0xb9   :  { %585 = vst [vmem:[#allocation5 + $0x580] sm:$0xff] %v393_v35 }
  0xba   :  { %586 = vst [vmem:[#allocation5 + $0x588] sm:$0xff] %v394_v37 }
  0xbb   :  { %587 = vst [vmem:[#allocation5 + $0x590] sm:$0xff] %v395_v39 }
  0xbc   :  { %588 = vst [vmem:[#allocation5 + $0x598] sm:$0xff] %v396_v41 }
  0xbd   :  { %589 = vst [vmem:[#allocation5 + $0x5a0] sm:$0xff] %v397_v43 }
  0xbe   :  { %590 = vst [vmem:[#allocation5 + $0x5a8] sm:$0xff] %v398_v45 }
  0xbf   :  { %591 = vst [vmem:[#allocation5 + $0x5b0] sm:$0xff] %v399_v47 }
  0xc0   :  { %592 = vst [vmem:[#allocation5 + $0x5b8] sm:$0xff] %v400_v49 }
  0xc1   :  { %593 = vst [vmem:[#allocation5 + $0x5c0] sm:$0xff] %v401_v51 }
  0xc2   :  { %594 = vst [vmem:[#allocation5 + $0x5c8] sm:$0xff] %v402_v53 }
  0xc3   :  { %595 = vst [vmem:[#allocation5 + $0x5d0] sm:$0xff] %v403_v55 }
  0xc4   :  { %596 = vst [vmem:[#allocation5 + $0x5d8] sm:$0xff] %v404_v57 }
  0xc5   :  { %597 = vst [vmem:[#allocation5 + $0x5e0] sm:$0xff] %v405_v59 }
  0xc6   :  { %598 = vst [vmem:[#allocation5 + $0x5e8] sm:$0xff] %v406_v61 }
  0xc7   :  { %599 = vst [vmem:[#allocation5 + $0x5f0] sm:$0xff] %v407_v62 }
  0xc8   :  { %600 = vst [vmem:[#allocation5 + $0x5f8] sm:$0xff] %v408_v63 }
  0xc9   :  { %613 = dma.vmem_to_hbm [thread:$0]  %s606_s13, 24576, %s608_s16, [#allocation4], %s677_s11, %s677_s11, %s678_s12  }
  0xca   :  { %674 = dma.done.wait [#allocation4], 24576  }
  0xcb   :  { %675 = vsyncadd [#allocation4], 4294942720 }
  0xcc   :  { %618 = vsyncpa [#allocation3], 1 }
  0xcd   :  { %619 = vsyncpa [#allocation4], 1 }

</bundles_post_ra>
